<compile_context>
chip_gen: v7x
topology: tpu7x:2x2x1
jax: 0.10.0
libtpu: 0.0.40
codegen_flags: <defaults>
</compile_context>

<pallas_src>
import math

import jax
import jax.numpy as jnp
from jax.experimental import pallas as pl
from jax.experimental.pallas import tpu as pltpu

HIDDEN = 256
HEAD = 128


def _round_up(x, m):
    return ((x + m - 1) // m) * m


def ddqn_kernel(x_ref,
                w1_ref, b1_ref,
                w2_ref, b2_ref,
                wh_ref, bh_ref,
                wo_ref, bo_ref,
                q_ref):
    # Matmul inputs in bf16 (MXU-native), accumulate + elementwise in f32.
    x = x_ref[...].astype(jnp.bfloat16)

    # trunk: fc1 -> relu -> fc2 -> relu
    h1 = jnp.maximum(
        jnp.dot(x, w1_ref[...], preferred_element_type=jnp.float32) + b1_ref[...],
        0.0)
    h2 = jnp.maximum(
        jnp.dot(h1.astype(jnp.bfloat16), w2_ref[...],
                preferred_element_type=jnp.float32) + b2_ref[...],
        0.0)

    # fused value/advantage hidden layer:
    #   heads[:, :128] = relu(value_fc), heads[:, 128:] = relu(adv_fc)
    heads = jnp.maximum(
        jnp.dot(h2.astype(jnp.bfloat16), wh_ref[...],
                preferred_element_type=jnp.float32) + bh_ref[...],
        0.0)

    # fused block-diagonal output layer:
    #   out[:, 0] = value(val_h), out[:, 1:] = advantage(adv_h)
    out = jnp.dot(heads.astype(jnp.bfloat16), wo_ref[...],
                  preferred_element_type=jnp.float32) + bo_ref[...]

    val = out[:, :1]
    adv = out[:, 1:]
    q_ref[...] = (val + adv - jnp.mean(adv, axis=1, keepdims=True)).astype(q_ref.dtype)


def ddqn_forward(x, fused, *, block_batch=512):
    """x: [B, state_size] f32. fused: output of prepare_params()."""
    B, state_size = x.shape
    out_dim = fused["wo"].shape[1]          # 1 + action_size
    action_size = out_dim - 1

    # Batch tile: >= 8 sublanes, capped (VMEM headroom even on v7x's 64 MiB).
    tb = min(block_batch, _round_up(B, 8))
    bp = _round_up(B, tb)
    if bp != B:
        x = jnp.pad(x, ((0, bp - B), (0, 0)))

    grid = (pl.cdiv(bp, tb),)

    def full_spec(arr):
        # Whole-array block, constant block index -> stays VMEM-resident.
        return pl.BlockSpec(arr.shape, lambda i: (0, 0))

    weight_args = (fused["w1"], fused["b1"], fused["w2"], fused["b2"],
                   fused["wh"], fused["bh"], fused["wo"], fused["bo"])

    flops = 2 * bp * (state_size * HIDDEN + HIDDEN * HIDDEN
                      + HIDDEN * HIDDEN + HIDDEN * out_dim)
    bytes_accessed = (sum(int(a.size) * a.dtype.itemsize for a in weight_args)
                      + int(x.size) * x.dtype.itemsize
                      + bp * action_size * 4)

    q = pl.pallas_call(
        ddqn_kernel,
        out_shape=jax.ShapeDtypeStruct((bp, action_size), jnp.float32),
        grid=grid,
        in_specs=[pl.BlockSpec((tb, state_size), lambda i: (i, 0))]
                 + [full_spec(a) for a in weight_args],
        out_specs=pl.BlockSpec((tb, action_size), lambda i: (i, 0)),
        compiler_params=pltpu.CompilerParams(
            dimension_semantics=("parallel",)),
        cost_estimate=pl.CostEstimate(flops=flops, transcendentals=0,
                                      bytes_accessed=bytes_accessed),
    )(x, *weight_args)
    return q[:B]


def _init_linear(key, in_features, out_features):
    """Deterministic init mirroring nn.Linear's uniform(-1/sqrt(fan_in), ...).
    Weight returned as [in_features, out_features] (pre-transposed for x @ W)."""
    kw, kb = jax.random.split(key)
    bound = 1.0 / math.sqrt(in_features)
    w = jax.random.uniform(kw, (in_features, out_features),
                           minval=-bound, maxval=bound, dtype=jnp.float32)
    b = jax.random.uniform(kb, (1, out_features),
                           minval=-bound, maxval=bound, dtype=jnp.float32)
    return w, b


def make_params(key, state_size, action_size):
    keys = jax.random.split(key, 6)
    w1, b1 = _init_linear(keys[0], state_size, HIDDEN)
    w2, b2 = _init_linear(keys[1], HIDDEN, HIDDEN)
    wv1, bv1 = _init_linear(keys[2], HIDDEN, HEAD)
    wv2, bv2 = _init_linear(keys[3], HEAD, 1)
    wa1, ba1 = _init_linear(keys[4], HIDDEN, HEAD)
    wa2, ba2 = _init_linear(keys[5], HEAD, action_size)
    return dict(w1=w1, b1=b1, w2=w2, b2=b2,
                wv1=wv1, bv1=bv1, wv2=wv2, bv2=bv2,
                wa1=wa1, ba1=ba1, wa2=wa2, ba2=ba2)


def prepare_params(p, compute_dtype=jnp.bfloat16):
    """Fuse the two dueling heads and cast matmul weights to bf16.

    wh = [value_fc | adv_fc]            -> [256, 256]
    wo = blockdiag(value, advantage)    -> [256, 1 + action_size]
    Biases stay f32 (elementwise work is f32 on all generations)."""
    action_size = p["wa2"].shape[1]
    w_heads = jnp.concatenate([p["wv1"], p["wa1"]], axis=1)           # [256, 256]
    b_heads = jnp.concatenate([p["bv1"], p["ba1"]], axis=1)           # [1, 256]
    w_out = jnp.zeros((2 * HEAD, 1 + action_size), jnp.float32)
    w_out = w_out.at[:HEAD, :1].set(p["wv2"]).at[HEAD:, 1:].set(p["wa2"])
    b_out = jnp.concatenate([p["bv2"], p["ba2"]], axis=1)             # [1, 1+A]
    return dict(
        w1=p["w1"].astype(compute_dtype), b1=p["b1"],
        w2=p["w2"].astype(compute_dtype), b2=p["b2"],
        wh=w_heads.astype(compute_dtype), bh=b_heads,
        wo=w_out.astype(compute_dtype), bo=b_out,
    )


def ddqn_reference_f32(x, p):
    """Pure-JAX reference of the original module (f32, unfused)."""
    h = jax.nn.relu(x @ p["w1"] + p["b1"])
    h = jax.nn.relu(h @ p["w2"] + p["b2"])
    val = jax.nn.relu(h @ p["wv1"] + p["bv1"]) @ p["wv2"] + p["bv2"]
    adv = jax.nn.relu(h @ p["wa1"] + p["ba1"]) @ p["wa2"] + p["ba2"]
    return val + adv - adv.mean(axis=1, keepdims=True)


def ddqn_reference_fused(x, fused):
    """Pure-JAX reference mirroring the kernel's fused / bf16 math."""
    bf = jnp.bfloat16
    h1 = jax.nn.relu(jnp.dot(x.astype(bf), fused["w1"],
                             preferred_element_type=jnp.float32) + fused["b1"])
    h2 = jax.nn.relu(jnp.dot(h1.astype(bf), fused["w2"],
                             preferred_element_type=jnp.float32) + fused["b2"])
    heads = jax.nn.relu(jnp.dot(h2.astype(bf), fused["wh"],
                                preferred_element_type=jnp.float32) + fused["bh"])
    out = jnp.dot(heads.astype(bf), fused["wo"],
                  preferred_element_type=jnp.float32) + fused["bo"]
    val, adv = out[:, :1], out[:, 1:]
    return val + adv - adv.mean(axis=1, keepdims=True)


if __name__ == "__main__":
    key = jax.random.PRNGKey(0)
    k_params, k_x = jax.random.split(key)

    batch = 2
    state_size = 16
    action_size = 4

    params = make_params(k_params, state_size, action_size)
    fused = prepare_params(params)
    x = jax.random.normal(k_x, (batch, state_size), dtype=jnp.float32)

    q = jax.block_until_ready(ddqn_forward(x, fused))
    assert q.shape == (batch, action_size)

    # Strict check against a pure-JAX reference with identical fused/bf16 math.
    q_fused_ref = ddqn_reference_fused(x, fused)
    assert jnp.allclose(q, q_fused_ref, atol=5e-3, rtol=1e-2), \
        "mismatch vs fused bf16 reference"

    # Loose check against the original-module f32 reference (bf16 weight drift only).
    q_f32_ref = ddqn_reference_f32(x, params)
    assert jnp.allclose(q, q_f32_ref, atol=5e-2, rtol=5e-2), \
        "drift vs f32 reference too large"

    print("KERNEL_OK")
</pallas_src>

<mosaic_0001>
module attributes {stable_mosaic.version = 11 : i64} {
  func.func @ddqn_kernel(%arg0: i32, %arg1: memref<8x16xf32, #tpu.memory_space<vmem>>, %arg2: memref<16x256xbf16, #tpu.memory_space<vmem>>, %arg3: memref<1x256xf32, #tpu.memory_space<vmem>>, %arg4: memref<256x256xbf16, #tpu.memory_space<vmem>>, %arg5: memref<1x256xf32, #tpu.memory_space<vmem>>, %arg6: memref<256x256xbf16, #tpu.memory_space<vmem>>, %arg7: memref<1x256xf32, #tpu.memory_space<vmem>>, %arg8: memref<256x5xbf16, #tpu.memory_space<vmem>>, %arg9: memref<1x5xf32, #tpu.memory_space<vmem>>, %arg10: memref<8x4xf32, #tpu.memory_space<vmem>>) attributes {dimension_semantics = [#tpu.dimension_semantics<parallel>], iteration_bounds = array<i64: 1>, scalar_prefetch = 0 : i64, scratch_operands = 0 : i64, tpu.core_type = #tpu.core_type<tc>, window_params = [{transform_indices = @transform_0, window_bounds = array<i64: 8, 16>}, {pipeline_mode = #tpu.pipeline_mode<synchronous>, transform_indices = @transform_1, window_bounds = array<i64: 16, 256>}, {pipeline_mode = #tpu.pipeline_mode<synchronous>, transform_indices = @transform_2, window_bounds = array<i64: 1, 256>}, {pipeline_mode = #tpu.pipeline_mode<synchronous>, transform_indices = @transform_3, window_bounds = array<i64: 256, 256>}, {pipeline_mode = #tpu.pipeline_mode<synchronous>, transform_indices = @transform_4, window_bounds = array<i64: 1, 256>}, {pipeline_mode = #tpu.pipeline_mode<synchronous>, transform_indices = @transform_5, window_bounds = array<i64: 256, 256>}, {pipeline_mode = #tpu.pipeline_mode<synchronous>, transform_indices = @transform_6, window_bounds = array<i64: 1, 256>}, {pipeline_mode = #tpu.pipeline_mode<synchronous>, transform_indices = @transform_7, window_bounds = array<i64: 256, 5>}, {pipeline_mode = #tpu.pipeline_mode<synchronous>, transform_indices = @transform_8, window_bounds = array<i64: 1, 5>}, {transform_indices = @transform_9, window_bounds = array<i64: 8, 4>}]} {
    %c0 = arith.constant 0 : index
    %c0_0 = arith.constant 0 : index
    %0 = vector.load %arg1[%c0, %c0_0] : memref<8x16xf32, #tpu.memory_space<vmem>>, vector<8x16xf32>
    %1 = arith.truncf %0 : vector<8x16xf32> to vector<8x16xbf16>
    %c0_1 = arith.constant 0 : index
    %c0_2 = arith.constant 0 : index
    %2 = vector.load %arg2[%c0_1, %c0_2] : memref<16x256xbf16, #tpu.memory_space<vmem>>, vector<16x256xbf16>
    %cst = arith.constant dense<0.000000e+00> : vector<8x256xf32>
    %3 = tpu.matmul %1, %2, %cst {dimension_numbers = #tpu.dot_dimension_numbers<[1], [0], [0], [1], [0, 0, 1, 1], [], []>} : vector<8x16xbf16>, vector<16x256xbf16>, vector<8x256xf32> -> vector<8x256xf32>
    %c0_3 = arith.constant 0 : index
    %c0_4 = arith.constant 0 : index
    %4 = vector.load %arg3[%c0_3, %c0_4] : memref<1x256xf32, #tpu.memory_space<vmem>>, vector<1x256xf32>
    %5 = vector.broadcast %4 : vector<1x256xf32> to vector<8x256xf32>
    %6 = arith.addf %3, %5 : vector<8x256xf32>
    %cst_5 = arith.constant 0.000000e+00 : f32
    %7 = vector.broadcast %cst_5 : f32 to vector<8x256xf32>
    %8 = arith.maximumf %6, %7 : vector<8x256xf32>
    %9 = arith.truncf %8 : vector<8x256xf32> to vector<8x256xbf16>
    %c0_6 = arith.constant 0 : index
    %c0_7 = arith.constant 0 : index
    %10 = vector.load %arg4[%c0_6, %c0_7] : memref<256x256xbf16, #tpu.memory_space<vmem>>, vector<256x256xbf16>
    %cst_8 = arith.constant dense<0.000000e+00> : vector<8x256xf32>
    %11 = tpu.matmul %9, %10, %cst_8 {dimension_numbers = #tpu.dot_dimension_numbers<[1], [0], [0], [1], [0, 0, 1, 1], [], []>} : vector<8x256xbf16>, vector<256x256xbf16>, vector<8x256xf32> -> vector<8x256xf32>
    %c0_9 = arith.constant 0 : index
    %c0_10 = arith.constant 0 : index
    %12 = vector.load %arg5[%c0_9, %c0_10] : memref<1x256xf32, #tpu.memory_space<vmem>>, vector<1x256xf32>
    %13 = vector.broadcast %12 : vector<1x256xf32> to vector<8x256xf32>
    %14 = arith.addf %11, %13 : vector<8x256xf32>
    %cst_11 = arith.constant 0.000000e+00 : f32
    %15 = vector.broadcast %cst_11 : f32 to vector<8x256xf32>
    %16 = arith.maximumf %14, %15 : vector<8x256xf32>
    %17 = arith.truncf %16 : vector<8x256xf32> to vector<8x256xbf16>
    %c0_12 = arith.constant 0 : index
    %c0_13 = arith.constant 0 : index
    %18 = vector.load %arg6[%c0_12, %c0_13] : memref<256x256xbf16, #tpu.memory_space<vmem>>, vector<256x256xbf16>
    %cst_14 = arith.constant dense<0.000000e+00> : vector<8x256xf32>
    %19 = tpu.matmul %17, %18, %cst_14 {dimension_numbers = #tpu.dot_dimension_numbers<[1], [0], [0], [1], [0, 0, 1, 1], [], []>} : vector<8x256xbf16>, vector<256x256xbf16>, vector<8x256xf32> -> vector<8x256xf32>
    %c0_15 = arith.constant 0 : index
    %c0_16 = arith.constant 0 : index
    %20 = vector.load %arg7[%c0_15, %c0_16] : memref<1x256xf32, #tpu.memory_space<vmem>>, vector<1x256xf32>
    %21 = vector.broadcast %20 : vector<1x256xf32> to vector<8x256xf32>
    %22 = arith.addf %19, %21 : vector<8x256xf32>
    %cst_17 = arith.constant 0.000000e+00 : f32
    %23 = vector.broadcast %cst_17 : f32 to vector<8x256xf32>
    %24 = arith.maximumf %22, %23 : vector<8x256xf32>
    %25 = arith.truncf %24 : vector<8x256xf32> to vector<8x256xbf16>
    %c0_18 = arith.constant 0 : index
    %c0_19 = arith.constant 0 : index
    %26 = vector.load %arg8[%c0_18, %c0_19] : memref<256x5xbf16, #tpu.memory_space<vmem>>, vector<256x5xbf16>
    %cst_20 = arith.constant dense<0.000000e+00> : vector<8x5xf32>
    %27 = tpu.matmul %25, %26, %cst_20 {dimension_numbers = #tpu.dot_dimension_numbers<[1], [0], [0], [1], [0, 0, 1, 1], [], []>} : vector<8x256xbf16>, vector<256x5xbf16>, vector<8x5xf32> -> vector<8x5xf32>
    %c0_21 = arith.constant 0 : index
    %c0_22 = arith.constant 0 : index
    %28 = vector.load %arg9[%c0_21, %c0_22] : memref<1x5xf32, #tpu.memory_space<vmem>>, vector<1x5xf32>
    %29 = vector.broadcast %28 : vector<1x5xf32> to vector<8x5xf32>
    %30 = arith.addf %27, %29 : vector<8x5xf32>
    %31 = vector.extract_strided_slice %30 {offsets = [0, 0], sizes = [8, 1], strides = [1, 1]} : vector<8x5xf32> to vector<8x1xf32>
    %32 = vector.extract_strided_slice %30 {offsets = [0, 1], sizes = [8, 4], strides = [1, 1]} : vector<8x5xf32> to vector<8x4xf32>
    %33 = vector.broadcast %31 : vector<8x1xf32> to vector<8x4xf32>
    %34 = arith.addf %33, %32 : vector<8x4xf32>
    %cst_23 = arith.constant dense<0.000000e+00> : vector<8xf32>
    %35 = vector.multi_reduction <add>, %32, %cst_23 [1] : vector<8x4xf32> to vector<8xf32>
    %36 = vector.shape_cast %35 : vector<8xf32> to vector<8x1xf32>
    %cst_24 = arith.constant 4.000000e+00 : f32
    %37 = vector.broadcast %cst_24 : f32 to vector<8x1xf32>
    %38 = arith.divf %36, %37 : vector<8x1xf32>
    %39 = vector.broadcast %38 : vector<8x1xf32> to vector<8x4xf32>
    %40 = arith.subf %34, %39 : vector<8x4xf32>
    %c0_25 = arith.constant 0 : index
    %c0_26 = arith.constant 0 : index
    %41 = vector.load %arg10[%c0_25, %c0_26] : memref<8x4xf32, #tpu.memory_space<vmem>>, vector<8x4xf32>
    tpu.vector_store %arg10[%c0_25, %c0_26], %40 {strides = array<i32>} : memref<8x4xf32, #tpu.memory_space<vmem>>, vector<8x4xf32>,
    return
  }
  func.func @transform_0(%arg0: i32) -> (i32, i32) {
    %c0_i32 = arith.constant 0 : i32
    %c0_i32_0 = arith.constant 0 : i32
    return %arg0, %c0_i32 : i32, i32
  }
  func.func @transform_1(%arg0: i32) -> (i32, i32) {
    %c0_i32 = arith.constant 0 : i32
    %c0_i32_0 = arith.constant 0 : i32
    %c0_i32_1 = arith.constant 0 : i32
    return %c0_i32, %c0_i32_0 : i32, i32
  }
  func.func @transform_2(%arg0: i32) -> (i32, i32) {
    %c0_i32 = arith.constant 0 : i32
    %c0_i32_0 = arith.constant 0 : i32
    %c0_i32_1 = arith.constant 0 : i32
    return %c0_i32, %c0_i32_0 : i32, i32
  }
  func.func @transform_3(%arg0: i32) -> (i32, i32) {
    %c0_i32 = arith.constant 0 : i32
    %c0_i32_0 = arith.constant 0 : i32
    %c0_i32_1 = arith.constant 0 : i32
    return %c0_i32, %c0_i32_0 : i32, i32
  }
  func.func @transform_4(%arg0: i32) -> (i32, i32) {
    %c0_i32 = arith.constant 0 : i32
    %c0_i32_0 = arith.constant 0 : i32
    %c0_i32_1 = arith.constant 0 : i32
    return %c0_i32, %c0_i32_0 : i32, i32
  }
  func.func @transform_5(%arg0: i32) -> (i32, i32) {
    %c0_i32 = arith.constant 0 : i32
    %c0_i32_0 = arith.constant 0 : i32
    %c0_i32_1 = arith.constant 0 : i32
    return %c0_i32, %c0_i32_0 : i32, i32
  }
  func.func @transform_6(%arg0: i32) -> (i32, i32) {
    %c0_i32 = arith.constant 0 : i32
    %c0_i32_0 = arith.constant 0 : i32
    %c0_i32_1 = arith.constant 0 : i32
    return %c0_i32, %c0_i32_0 : i32, i32
  }
  func.func @transform_7(%arg0: i32) -> (i32, i32) {
    %c0_i32 = arith.constant 0 : i32
    %c0_i32_0 = arith.constant 0 : i32
    %c0_i32_1 = arith.constant 0 : i32
    return %c0_i32, %c0_i32_0 : i32, i32
  }
  func.func @transform_8(%arg0: i32) -> (i32, i32) {
    %c0_i32 = arith.constant 0 : i32
    %c0_i32_0 = arith.constant 0 : i32
    %c0_i32_1 = arith.constant 0 : i32
    return %c0_i32, %c0_i32_0 : i32, i32
  }
  func.func @transform_9(%arg0: i32) -> (i32, i32) {
    %c0_i32 = arith.constant 0 : i32
    %c0_i32_0 = arith.constant 0 : i32
    return %arg0, %c0_i32 : i32, i32
  }
}

</mosaic_0001>

<bundles_post_ra>
// kernel: tpu_custom_call.1
= control target key start
LH: loop header
LB: loop body
LE: loop exit
PB: predicated region body
PF: predicated region fallthrough
CT: control target
= control target key end

     0   :  { %14 = vsyncpa [#allocation3], 0  ;;  %s1275_s0 = inlined_call_operand.vmem [shape: f32[8,16], index: 0, kind: input, shape index: {}]   ;;  %s1276_s1 = inlined_call_operand.vmem [shape: bf16[16,256], index: 1, kind: input, shape index: {}]   ;;  %s1277_s2 = inlined_call_operand.vmem [shape: f32[1,256], index: 2, kind: input, shape index: {}]   ;;  %s1278_s3 = inlined_call_operand.hbm [shape: bf16[256,256], index: 3, kind: input, shape index: {}]   ;;  %s1279_s4 = inlined_call_operand.vmem [shape: f32[1,256], index: 4, kind: input, shape index: {}]   ;;  %s1280_s5 = inlined_call_operand.hbm [shape: bf16[256,256], index: 5, kind: input, shape index: {}]   ;;  %s1281_s6 = inlined_call_operand.vmem [shape: f32[1,256], index: 6, kind: input, shape index: {}]   ;;  %s1282_s7 = inlined_call_operand.vmem [shape: bf16[256,5], index: 7, kind: input, shape index: {}]   ;;  %s1283_s8 = inlined_call_operand.vmem [shape: f32[1,5], index: 8, kind: input, shape index: {}]   ;;  %s1284_s9 = inlined_call_operand.vmem [shape: f32[8,4], index: 9, kind: output, shape index: {}]  }
   0x1   :  { %15 = vsyncpa [#allocation5], 0  ;;  %s1113_s30 = smov [#allocation2]   ;;  %s1065_s13 = scalar_lea.hbm %s1278_s3, 4096 }
   0x2   :  { %s27_s10 = sshll.u32 %s1113_s30, 4  ;;  %p1066_p0 = scmp.ne.s32.totalorder %s1278_s3, %s1065_s13  ;;  %s28_s10 = int_to_ptr.vmem [resolvable:$true] %s27_s10 }
   0x3   :  { %p1069_p1 = scmp.lt.u32.totalorder %s1065_s13, %s1278_s3 }
   0x5   :  { %p1071_p2 = pnand %p1069_p1, %p1066_p0 }
   0x7   :  { %1074 = shalt.err (!%p1071_p2)
}
   0x8   :  { %s1075_s18 = scalar_lea.vmem %s28_s10, 4096  ;;  %p1080_p4 = scmp.lt.s32.totalorder %s28_s10, %s28_s10 }
   0x9   :  { %p1076_p3 = scmp.ne.s32.totalorder %s28_s10, %s1075_s18  ;;  %p1081_p5 = scmp.lt.s32.totalorder %s1075_s18, %s1075_s18 }
   0xb   :  { %p1082_p6 = por %p1081_p5, %p1080_p4 }
   0xd   :  { %p1083_p7 = pnand %p1082_p6, %p1076_p3 }
   0xf   :  { %1086 = shalt.err (!%p1083_p7)
}
  0x10   :  { %s1114_s19 = smov 128   ;;  %s1115_s20 = smov 8  }
  0x11   :  { %33 = dma.hbm_to_vmem [thread:$0]  %s1278_s3, 4096, %s28_s10, [#allocation3], %s1114_s19, %s1114_s19, %s1115_s20  }
  0x12   :  { %s1116_s23 = smov [#allocation4]   ;;  %s1087_s27 = scalar_lea.hbm %s1280_s5, 4096 }
  0x13   :  { %s41_s24 = sshll.u32 %s1116_s23, 4  ;;  %p1088_p8 = scmp.ne.s32.totalorder %s1280_s5, %s1087_s27  ;;  %s42_s24 = int_to_ptr.vmem [resolvable:$true] %s41_s24 }
  0x14   :  { %p1091_p9 = scmp.lt.u32.totalorder %s1087_s27, %s1280_s5 }
  0x16   :  { %p1093_p10 = pnand %p1091_p9, %p1088_p8 }
  0x18   :  { %1096 = shalt.err (!%p1093_p10)
}
  0x19   :  { %s1097_s12 = scalar_lea.vmem %s42_s24, 4096  ;;  %p1102_p12 = scmp.lt.s32.totalorder %s42_s24, %s42_s24 }
  0x1a   :  { %p1098_p11 = scmp.ne.s32.totalorder %s42_s24, %s1097_s12  ;;  %p1103_p13 = scmp.lt.s32.totalorder %s1097_s12, %s1097_s12 }
  0x1c   :  { %p1104_p0 = por %p1103_p13, %p1102_p12 }
  0x1e   :  { %p1105_p1 = pnand %p1104_p0, %p1098_p11 }
  0x20   :  { %1108 = shalt.err (!%p1105_p1)
}
  0x21   :  { %47 = dma.hbm_to_vmem [thread:$0]  %s1280_s5, 4096, %s42_s24, [#allocation5], %s1114_s19, %s1114_s19, %s1115_s20  }
  0x22   :  { %1109 = dma.done.wait [#allocation3], 4096  }
  0x23   :  { %1110 = vsyncadd [#allocation3], 4294963200 }
  0x24   :  { %1111 = dma.done.wait [#allocation5], 4096  }
  0x25   :  { %1112 = vsyncadd [#allocation5], 4294963200  ;;  %v1117_v0 = vmov 0   ;;  %v950_v1 = vld [vmem:[%s1276_s1 + $0x4] ss:$8 sps:$4 sm:$0xff]   ;;  %vm87_vm0 = vcmask 130048  }
  0x26   :  { %123 = vmatprep.mubr.bf16.mxu0 %v1117_v0  ;;  %948 = vset.pattern.permute.xlu1 %v1117_v0  ;;  %v952_v2 = vld [vmem:[%s1276_s1] ss:$8 sps:$4 sm:$0xff]   ;;  %v953_v5 = vld [vmem:[#allocation2 + $0x4] ss:$8 sps:$4 sm:$0xff]   ;;  %v956_v7 = vld [vmem:[#allocation2 + $0x14] ss:$8 sps:$4 sm:$0xff]  }
  0x27   :  { %949 = vset.pattern.permute.xlu0 %v1117_v0  ;;  %v61_v3 = vld [vmem:[%s1275_s0] sm:$0xff]  ;;  %91 = vmatprep.subr.bf16.mxu0 %v950_v1  ;;  %v958_v8 = vld [vmem:[#allocation2 + $0x10] ss:$8 sps:$4 sm:$0xff]   ;;  %v962_v11 = vld [vmem:[#allocation2 + $0x34] ss:$8 sps:$4 sm:$0xff]   ;;  %v67_v1 = vlaneseq  ;;  %vm818_vm1 = vcmask 31744  }
  0x28   :  { %v62_v4 = vpack.c.bf16 %v61_v3, %v61_v3  ;;  %v955_v6 = vld [vmem:[#allocation2] ss:$8 sps:$4 sm:$0xff]   ;;  %92 = vmatpush1.bf16.msra.mxu0 %v952_v2  ;;  %340 = vmatprep.subr.bf16.mxu1 %v953_v5  ;;  %v959_v9 = vld [vmem:[#allocation2 + $0x24] ss:$8 sps:$4 sm:$0xff]   ;;  %v964_v12 = vld [vmem:[#allocation2 + $0x30] ss:$8 sps:$4 sm:$0xff]  }
  0x29   :  { %341 = vmatpush1.bf16.msra.mxu1 %v955_v6  ;;  %v961_v10 = vld [vmem:[#allocation2 + $0x20] ss:$8 sps:$4 sm:$0xff]   ;;  %v965_v13 = vld [vmem:[#allocation2 + $0x44] ss:$8 sps:$4 sm:$0xff]   ;;  %v968_v15 = vld [vmem:[#allocation2 + $0x54] ss:$8 sps:$4 sm:$0xff]  }
  0x2a   :  { %342 = vmatprep.subr.bf16.mxu1 %v956_v7  ;;  %v967_v14 = vld [vmem:[#allocation2 + $0x40] ss:$8 sps:$4 sm:$0xff]   ;;  %v970_v16 = vld [vmem:[#allocation2 + $0x50] ss:$8 sps:$4 sm:$0xff]   ;;  %v971_v17 = vld [vmem:[#allocation2 + $0x64] ss:$8 sps:$4 sm:$0xff]  }
  0x2b   :  { %838 = vmatmul.mubr.msk.bf16.vlgmr.msra.gmra.mrb[0].mxu0 %vm87_vm0, %v62_v4  ;;  %v973_v18 = vld [vmem:[#allocation2 + $0x60] ss:$8 sps:$4 sm:$0xff]   ;;  %v974_v19 = vld [vmem:[#allocation2 + $0x74] ss:$8 sps:$4 sm:$0xff]   ;;  %v976_v20 = vld [vmem:[#allocation2 + $0x70] ss:$8 sps:$4 sm:$0xff]  }
  0x2c   :  { %v977_v21 = vld [vmem:[#allocation2 + $0x84] ss:$8 sps:$4 sm:$0xff]   ;;  %v979_v22 = vld [vmem:[#allocation2 + $0x80] ss:$8 sps:$4 sm:$0xff]   ;;  %v980_v23 = vld [vmem:[#allocation2 + $0x94] ss:$8 sps:$4 sm:$0xff]  }
  0x2d   :  { %343 = vmatpush1.bf16.msra.mxu1 %v958_v8  ;;  %v982_v24 = vld [vmem:[#allocation2 + $0x90] ss:$8 sps:$4 sm:$0xff]   ;;  %v983_v25 = vld [vmem:[#allocation2 + $0xa4] ss:$8 sps:$4 sm:$0xff]   ;;  %v985_v26 = vld [vmem:[#allocation2 + $0xa0] ss:$8 sps:$4 sm:$0xff]  }
  0x2e   :  { %344 = vmatprep.subr.bf16.mxu1 %v959_v9  ;;  %v986_v27 = vld [vmem:[#allocation2 + $0xb4] ss:$8 sps:$4 sm:$0xff]   ;;  %v988_v28 = vld [vmem:[#allocation2 + $0xb0] ss:$8 sps:$4 sm:$0xff]   ;;  %v989_v29 = vld [vmem:[#allocation2 + $0xc4] ss:$8 sps:$4 sm:$0xff]  }
  0x2f   :  { %v991_v30 = vld [vmem:[#allocation2 + $0xc0] ss:$8 sps:$4 sm:$0xff]   ;;  %v992_v31 = vld [vmem:[#allocation2 + $0xd4] ss:$8 sps:$4 sm:$0xff]   ;;  %v994_v32 = vld [vmem:[#allocation2 + $0xd0] ss:$8 sps:$4 sm:$0xff]  }
  0x30   :  { %v995_v33 = vld [vmem:[#allocation2 + $0xe4] ss:$8 sps:$4 sm:$0xff]   ;;  %v997_v34 = vld [vmem:[#allocation2 + $0xe0] ss:$8 sps:$4 sm:$0xff]   ;;  %v998_v35 = vld [vmem:[#allocation2 + $0xf4] ss:$8 sps:$4 sm:$0xff]  }
  0x31   :  { %345 = vmatpush1.bf16.msra.mxu1 %v961_v10  ;;  %v1000_v36 = vld [vmem:[#allocation2 + $0xf0] ss:$8 sps:$4 sm:$0xff]   ;;  %v1001_v37 = vld [vmem:[#allocation4] ss:$8 sps:$4 sm:$0xff]   ;;  %v1003_v38 = vld [vmem:[#allocation4 + $0x4] ss:$8 sps:$4 sm:$0xff]  }
  0x32   :  { %346 = vmatprep.subr.bf16.mxu1 %v962_v11  ;;  %v1006_v39 = vld [vmem:[#allocation4 + $0x14] ss:$8 sps:$4 sm:$0xff]   ;;  %589 = vmatprep.subr.bf16.mxu0 %v1003_v38  ;;  %v1004_v40 = vld [vmem:[#allocation4 + $0x10] ss:$8 sps:$4 sm:$0xff]   ;;  %v1009_v41 = vld [vmem:[#allocation4 + $0x24] ss:$8 sps:$4 sm:$0xff]  }
  0x33   :  { %590 = vmatpush1.bf16.msra.mxu0 %v1001_v37  ;;  %v1007_v42 = vld [vmem:[#allocation4 + $0x20] ss:$8 sps:$4 sm:$0xff]   ;;  %v1012_v43 = vld [vmem:[#allocation4 + $0x34] ss:$8 sps:$4 sm:$0xff]   ;;  %v1010_v44 = vld [vmem:[#allocation4 + $0x30] ss:$8 sps:$4 sm:$0xff]  }
  0x34   :  { %591 = vmatprep.subr.bf16.mxu0 %v1006_v39  ;;  %v1015_v45 = vld [vmem:[#allocation4 + $0x44] ss:$8 sps:$4 sm:$0xff]   ;;  %v1013_v46 = vld [vmem:[#allocation4 + $0x40] ss:$8 sps:$4 sm:$0xff]   ;;  %v1018_v47 = vld [vmem:[#allocation4 + $0x54] ss:$8 sps:$4 sm:$0xff]  }
  0x35   :  { %347 = vmatpush1.bf16.msra.mxu1 %v964_v12  ;;  %v1016_v48 = vld [vmem:[#allocation4 + $0x50] ss:$8 sps:$4 sm:$0xff]   ;;  %v1021_v49 = vld [vmem:[#allocation4 + $0x64] ss:$8 sps:$4 sm:$0xff]   ;;  %v1019_v50 = vld [vmem:[#allocation4 + $0x60] ss:$8 sps:$4 sm:$0xff]  }
  0x36   :  { %348 = vmatprep.subr.bf16.mxu1 %v965_v13  ;;  %v1024_v51 = vld [vmem:[#allocation4 + $0x74] ss:$8 sps:$4 sm:$0xff]   ;;  %v1022_v52 = vld [vmem:[#allocation4 + $0x70] ss:$8 sps:$4 sm:$0xff]   ;;  %v1027_v53 = vld [vmem:[#allocation4 + $0x84] ss:$8 sps:$4 sm:$0xff]  }
  0x37   :  { %592 = vmatpush1.bf16.msra.mxu0 %v1004_v40  ;;  %v1025_v54 = vld [vmem:[#allocation4 + $0x80] ss:$8 sps:$4 sm:$0xff]   ;;  %v1030_v55 = vld [vmem:[#allocation4 + $0x94] ss:$8 sps:$4 sm:$0xff]   ;;  %v1028_v56 = vld [vmem:[#allocation4 + $0x90] ss:$8 sps:$4 sm:$0xff]  }
  0x38   :  { %593 = vmatprep.subr.bf16.mxu0 %v1009_v41  ;;  %v1033_v57 = vld [vmem:[#allocation4 + $0xa4] ss:$8 sps:$4 sm:$0xff]   ;;  %v1031_v58 = vld [vmem:[#allocation4 + $0xa0] ss:$8 sps:$4 sm:$0xff]   ;;  %v1036_v59 = vld [vmem:[#allocation4 + $0xb4] ss:$8 sps:$4 sm:$0xff]  }
  0x39   :  { %349 = vmatpush1.bf16.msra.mxu1 %v967_v14  ;;  %v1034_v60 = vld [vmem:[#allocation4 + $0xb0] ss:$8 sps:$4 sm:$0xff]   ;;  %v1039_v61 = vld [vmem:[#allocation4 + $0xc4] ss:$8 sps:$4 sm:$0xff]   ;;  %v1037_v62 = vld [vmem:[#allocation4 + $0xc0] ss:$8 sps:$4 sm:$0xff]  }
  0x3a   :  { %350 = vmatprep.subr.bf16.mxu1 %v968_v15  ;;  %v1042_v63 = vld [vmem:[#allocation4 + $0xd4] ss:$8 sps:$4 sm:$0xff]   ;;  %v1040_v0 = vld [vmem:[#allocation4 + $0xd0] ss:$8 sps:$4 sm:$0xff]   ;;  %v68_v2 = vshrl.u32 %v67_v1, 7 }
  0x3b   :  { %594 = vmatpush1.bf16.msra.mxu0 %v1007_v42  ;;  %v65_v4 = vld [vmem:[%s1277_s2] sm:$0x3] }
  0x3c   :  { %595 = vmatprep.subr.bf16.mxu0 %v1012_v43  ;;  %v1202_v3 = vsub.s32 0, %v68_v2  ;;  %v1207_v5 = vsub.s32 1, %v68_v2  ;;  %v903_v1 = vld [vmem:[%s1283_s8] ss:$0 sm:$0xff] }
  0x3d   :  { %351 = vmatpush1.bf16.msra.mxu1 %v970_v16 }
  0x3e   :  { %352 = vmatprep.subr.bf16.mxu1 %v971_v17  ;;  %v70_v6 = vrot.slane %v65_v4, %v1202_v3  ;;  %v74_v7 = vrot.slane %v65_v4, %v1207_v5 }
  0x3f   :  { %596 = vmatpush1.bf16.msra.mxu0 %v1010_v44 }
  0x40   :  { %597 = vmatprep.subr.bf16.mxu0 %v1015_v45 }
  0x41   :  { %353 = vmatpush1.bf16.msra.mxu1 %v973_v18  ;;  %v1045_v18 = vld [vmem:[#allocation4 + $0xe4] ss:$8 sps:$4 sm:$0xff]  }
  0x42   :  { %354 = vmatprep.subr.bf16.mxu1 %v974_v19  ;;  %v1043_v19 = vld [vmem:[#allocation4 + $0xe0] ss:$8 sps:$4 sm:$0xff]  }
  0x43   :  { %598 = vmatpush1.bf16.msra.mxu0 %v1013_v46 }
  0x44   :  { %599 = vmatprep.subr.bf16.mxu0 %v1018_v47  ;;  %v1061_v47 = vld [vmem:[%s1282_s7 + $0x70] sm:$0xff]  }
  0x45   :  { %355 = vmatpush1.bf16.msra.mxu1 %v976_v20  ;;  %v1048_v20 = vld [vmem:[#allocation4 + $0xf4] ss:$8 sps:$4 sm:$0xff]  }
  0x46   :  { %356 = vmatprep.subr.bf16.mxu1 %v977_v21  ;;  %v1046_v21 = vld [vmem:[#allocation4 + $0xf0] ss:$8 sps:$4 sm:$0xff]  }
  0x47   :  { %600 = vmatpush1.bf16.msra.mxu0 %v1016_v48  ;;  %v1062_v48 = vld [vmem:[%s1282_s7 + $0x30] sm:$0xff]  }
  0x48   :  { %601 = vmatprep.subr.bf16.mxu0 %v1021_v49  ;;  %v1063_v49 = vld [vmem:[%s1282_s7 + $0x78] sm:$0xff]  }
  0x49   :  { %357 = vmatpush1.bf16.msra.mxu1 %v979_v22  ;;  %v1049_v22 = vld [vmem:[%s1282_s7 + $0x40] sm:$0xff]  }
  0x4a   :  { %358 = vmatprep.subr.bf16.mxu1 %v980_v23  ;;  %v1050_v23 = vld [vmem:[%s1282_s7] sm:$0xff]  }
  0x4b   :  { %602 = vmatpush1.bf16.msra.mxu0 %v1019_v50  ;;  %v1064_v50 = vld [vmem:[%s1282_s7 + $0x38] sm:$0xff]  }
  0x4c   :  { %603 = vmatprep.subr.bf16.mxu0 %v1024_v51  ;;  %v417_v51 = vld [vmem:[%s1281_s6] sm:$0x3]  ;;  %s1118_s6 = smov 127  }
  0x4d   :  { %359 = vmatpush1.bf16.msra.mxu1 %v982_v24  ;;  %v1051_v24 = vld [vmem:[%s1282_s7 + $0x48] sm:$0xff]  }
  0x4e   :  { %360 = vmatprep.subr.bf16.mxu1 %v983_v25  ;;  %v1052_v25 = vld [vmem:[%s1282_s7 + $0x8] sm:$0xff]  }
  0x4f   :  { %604 = vmatpush1.bf16.msra.mxu0 %v1022_v52  ;;  %v422_v52 = vrot.slane %v417_v51, %v1202_v3 }
  0x50   :  { %605 = vmatprep.subr.bf16.mxu0 %v1027_v53  ;;  %v426_v53 = vrot.slane %v417_v51, %v1207_v5 }
  0x51   :  { %361 = vmatpush1.bf16.msra.mxu1 %v985_v26  ;;  %v1053_v26 = vld [vmem:[%s1282_s7 + $0x50] sm:$0xff]  }
  0x52   :  { %362 = vmatprep.subr.bf16.mxu1 %v986_v27  ;;  %v1054_v27 = vld [vmem:[%s1282_s7 + $0x10] sm:$0xff]  }
  0x53   :  { %606 = vmatpush1.bf16.msra.mxu0 %v1025_v54 }
  0x54   :  { %607 = vmatprep.subr.bf16.mxu0 %v1030_v55 }
  0x55   :  { %363 = vmatpush1.bf16.msra.mxu1 %v988_v28  ;;  %v1055_v28 = vld [vmem:[%s1282_s7 + $0x58] sm:$0xff]  }
  0x56   :  { %364 = vmatprep.subr.bf16.mxu1 %v989_v29  ;;  %v1056_v29 = vld [vmem:[%s1282_s7 + $0x18] sm:$0xff]  }
  0x57   :  { %608 = vmatpush1.bf16.msra.mxu0 %v1028_v56 }
  0x58   :  { %609 = vmatprep.subr.bf16.mxu0 %v1033_v57 }
  0x59   :  { %365 = vmatpush1.bf16.msra.mxu1 %v991_v30  ;;  %v1057_v30 = vld [vmem:[%s1282_s7 + $0x60] sm:$0xff]  }
  0x5a   :  { %366 = vmatprep.subr.bf16.mxu1 %v992_v31  ;;  %v1058_v31 = vld [vmem:[%s1282_s7 + $0x20] sm:$0xff]  }
  0x5b   :  { %610 = vmatpush1.bf16.msra.mxu0 %v1031_v58 }
  0x5c   :  { %611 = vmatprep.subr.bf16.mxu0 %v1036_v59 }
  0x5d   :  { %367 = vmatpush1.bf16.msra.mxu1 %v994_v32  ;;  %v1059_v32 = vld [vmem:[%s1282_s7 + $0x68] sm:$0xff]  }
  0x5e   :  { %368 = vmatprep.subr.bf16.mxu1 %v995_v33  ;;  %v1060_v33 = vld [vmem:[%s1282_s7 + $0x28] sm:$0xff]  }
  0x5f   :  { %612 = vmatpush1.bf16.msra.mxu0 %v1034_v60 }
  0x60   :  { %613 = vmatprep.subr.bf16.mxu0 %v1039_v61 }
  0x61   :  { %369 = vmatpush1.bf16.msra.mxu1 %v997_v34  ;;  %v168_v34 = vld [vmem:[%s1279_s4] sm:$0x3] }
  0x62   :  { %370 = vmatprep.subr.bf16.mxu1 %v998_v35  ;;  %v173_v35 = vrot.slane %v168_v34, %v1202_v3 }
  0x63   :  { %614 = vmatpush1.bf16.msra.mxu0 %v1037_v62 }
  0x64   :  { %615 = vmatprep.subr.bf16.mxu0 %v1042_v63 }
  0x65   :  { %371 = vmatpush1.bf16.msra.mxu1 %v1000_v36  ;;  %v177_v36 = vrot.slane %v168_v34, %v1207_v5 }
  0x66   :  { %920 = vmatprep.subr.bf16.mxu1 %v1049_v22 }
  0x67   :  { %616 = vmatpush1.bf16.msra.mxu0 %v1040_v0 }
  0x68   :  { %617 = vmatprep.subr.bf16.mxu0 %v1045_v18 }
  0x6b   :  { %618 = vmatpush1.bf16.msra.mxu0 %v1043_v19 }
  0x6c   :  { %619 = vmatprep.subr.bf16.mxu0 %v1048_v20 }
  0x6f   :  { %620 = vmatpush1.bf16.msra.mxu0 %v1046_v21 }
  0xfe   :  { %v125_v8 = vpop.f32.mrb[0].mxu0 }
  0xff   :  { %v126_v9 = vadd.f32 %v125_v8, %v70_v6  ;;  %v127_v10 = vpop.f32.mrb[1].mxu0 }
 0x100   :  { %v128_v11 = vadd.f32 %v127_v10, %v74_v7  ;;  %v129_v12 = vpop.f32.mrb[2].mxu0 }
 0x101   :  { %v132_v13 = vmax.f32 %v126_v9, 0.0  ;;  %v130_v14 = vpop.f32.mrb[3].mxu0 }
 0x102   :  { %v133_v15 = vmax.f32 %v128_v11, 0.0 }
 0x103   :  { %v134_v17 = vpack.c.bf16 %v132_v13, %v132_v13 }
 0x104   :  { %v135_v16 = vpack.c.bf16 %v133_v15, %v133_v15 }
 0x106   :  { %372 = vmatprep.mubr.bf16.mxu1 %v135_v16 }
 0x107   :  { %373 = vmatmul.mubr.bf16.vlgmr.msra.gmra.mrb[0].mxu1 %v134_v17 }
 0x108   :  { %921 = vmatpush3.bf16.msra.mxu1 %v1050_v23 }
 0x109   :  { %922 = vmatprep.subr.bf16.mxu1 %v1051_v24 }
 0x10c   :  { %923 = vmatpush3.bf16.msra.mxu1 %v1052_v25 }
 0x10d   :  { %924 = vmatprep.subr.bf16.mxu1 %v1053_v26 }
 0x110   :  { %925 = vmatpush3.bf16.msra.mxu1 %v1054_v27 }
 0x111   :  { %926 = vmatprep.subr.bf16.mxu1 %v1055_v28 }
 0x114   :  { %927 = vmatpush3.bf16.msra.mxu1 %v1056_v29 }
 0x115   :  { %928 = vmatprep.subr.bf16.mxu1 %v1057_v30 }
 0x118   :  { %929 = vmatpush3.bf16.msra.mxu1 %v1058_v31 }
 0x119   :  { %930 = vmatprep.subr.bf16.mxu1 %v1059_v32 }
 0x11c   :  { %931 = vmatpush3.bf16.msra.mxu1 %v1060_v33 }
 0x11d   :  { %932 = vmatprep.subr.bf16.mxu1 %v1061_v47 }
 0x120   :  { %933 = vmatpush3.bf16.msra.mxu1 %v1062_v48 }
 0x121   :  { %934 = vmatprep.subr.bf16.mxu1 %v1063_v49 }
 0x124   :  { %935 = vmatpush3.bf16.msra.mxu1 %v1064_v50 }
 0x1da   :  { %v374_v37 = vpop.f32.mrb[0].mxu1 }
 0x1db   :  { %v375_v38 = vadd.f32 %v374_v37, %v173_v35  ;;  %v376_v39 = vpop.f32.mrb[1].mxu1 }
 0x1dc   :  { %v377_v40 = vadd.f32 %v376_v39, %v177_v36  ;;  %v378_v41 = vpop.f32.mrb[2].mxu1 }
 0x1dd   :  { %v381_v42 = vmax.f32 %v375_v38, 0.0  ;;  %v379_v43 = vpop.f32.mrb[3].mxu1 }
 0x1de   :  { %v382_v44 = vmax.f32 %v377_v40, 0.0 }
 0x1df   :  { %v383_v46 = vpack.c.bf16 %v381_v42, %v381_v42 }
 0x1e0   :  { %v384_v45 = vpack.c.bf16 %v382_v44, %v382_v44 }
 0x1e2   :  { %621 = vmatprep.mubr.bf16.mxu0 %v384_v45 }
 0x1e3   :  { %622 = vmatmul.mubr.bf16.vlgmr.msra.gmra.mrb[4].mxu0 %v383_v46 }
 0x2b6   :  { %v623_v54 = vpop.f32.mrb[4].mxu0 }
 0x2b7   :  { %v624_v55 = vadd.f32 %v623_v54, %v422_v52  ;;  %v625_v56 = vpop.f32.mrb[5].mxu0 }
 0x2b8   :  { %v626_v57 = vadd.f32 %v625_v56, %v426_v53  ;;  %v627_v58 = vpop.f32.mrb[6].mxu0 }
 0x2b9   :  { %v630_v59 = vmax.f32 %v624_v55, 0.0  ;;  %v628_v60 = vpop.f32.mrb[7].mxu0 }
 0x2ba   :  { %v631_v61 = vmax.f32 %v626_v57, 0.0 }
 0x2bb   :  { %v632_v63 = vpack.c.bf16 %v630_v59, %v630_v59 }
 0x2bc   :  { %v633_v62 = vpack.c.bf16 %v631_v61, %v631_v61 }
 0x2be   :  { %801 = vmatprep.mubr.bf16.mxu1 %v633_v62 }
 0x2bf   :  { %802 = vmatmul.mubr.bf16.vlgmr.msra.gmra.mrb[4].mxu1 %v632_v63 }
 0x392   :  { %v936_v0 = vpop.f32.mrb[4].mxu1 }
 0x393   :  { %v937_v2 = vpop.f32.mrb[5].mxu1 }
 0x394   :  { %v938_v3 = vadd.f32 %v937_v2, %v936_v0  ;;  %v939_v4 = vpop.f32.mrb[6].mxu1 }
 0x395   :  { %v940_v5 = vpop.f32.mrb[7].mxu1 }
 0x396   :  { %v804_v6 = vadd.f32 %v938_v3, %v903_v1 }
 0x398   :  { %811 = vperm.xlu1 %948, %v804_v6   ;;  %815 = vrot.lane.b32.xlu0 %v804_v6, %s1118_s6 }
 0x40a   :  { %v816_v7 = vpop.permute.xlu0 %815 }
 0x40b   :  { %v819_v8 = vsel %vm818_vm1, %v816_v7, 0.0 }
 0x40c   :  { %820 = vadd.xlane.f32.xlu0 %v819_v8 }
 0x417   :  { %v812_v9 = vpop.permute.xlu1 %811 }
 0x418   :  { %v814_v11 = vadd.f32 %v812_v9, %v804_v6 }
 0x499   :  { %v821_v10 = vpop.xlane.xlu0 %820 }
 0x49a   :  { %v823_v12 = vmul.f32 0.25, %v821_v10 }
 0x49c   :  { %v824_v13 = vsub.f32 %v814_v11, %v823_v12 }
 0x49e   :  { %826 = vrot.lane.b32.xlu1 %v824_v13, %s1118_s6 }
 0x510   :  { %v827_v14 = vpop.permute.xlu1 %826 }
 0x511   :  { %829 = vst.msk [vmem:[%s1284_s9] sm:$0xff] %vm818_vm1, %v827_v14 }
 0x512   :  { %834 = vsyncpa [#allocation3], 1 }
 0x513   :  { %835 = vsyncpa [#allocation5], 1 }

</bundles_post_ra>
